<compile_context>
chip_gen: v5e
topology: v5e:2x2
jax: 0.10.0
libtpu: 0.0.40
codegen_flags: <defaults>
</compile_context>

<pallas_src>
import jax
import jax.numpy as jnp
from jax.experimental import pallas as pl
from jax.experimental.pallas import tpu as pltpu

IN_FEATURES = 16
HIDDEN = 24
OUT_FEATURES = 8
BATCH = 32            # small example batch for the __main__ smoke test

# Largest batch handled as ONE grid step.  Live footprint at this feature
# width is ~tm * 300 B (x, h1, h2, logits, out), so 4096 rows is ~1.2 MiB —
# nowhere near any generation's VMEM limit (incl. v7x's 64 MiB).
MAX_SINGLE_TILE = 4096
# Fat tiles for large batches: per-step overhead (~0.35 us) amortizes and the
# double-buffered footprint (~tm * 100 B for x + out) stays tiny.
TM_TILED = 2048


def mlp_kernel(x_ref, w1_ref, b1_ref, w2_ref, b2_ref, w3_ref, b3_ref, o_ref):
    x = x_ref[...]  # f32 (batch_tile, in_features)

    # Linear 1 + ReLU
    h1 = jnp.dot(x, w1_ref[...], preferred_element_type=jnp.float32) + b1_ref[...]
    h1 = jnp.maximum(h1, 0.0)

    # Linear 2 + ReLU
    h2 = jnp.dot(h1, w2_ref[...], preferred_element_type=jnp.float32) + b2_ref[...]
    h2 = jnp.maximum(h2, 0.0)

    # Linear 3 (true output width — no padded lanes)
    logits = jnp.dot(h2, w3_ref[...], preferred_element_type=jnp.float32) + b3_ref[...]

    # Numerically-stable softmax over the feature (lane) axis.
    # Exact divide so each row sums to 1 to f32 precision (the approximate EUP
    # reciprocal's ~1e-3 error is what broke the previous run).
    m = jnp.max(logits, axis=-1, keepdims=True)
    e = jnp.exp(logits - m)
    denom = jnp.sum(e, axis=-1, keepdims=True)
    o_ref[...] = (e / denom).astype(o_ref.dtype)


def _round_up(n, m):
    return ((n + m - 1) // m) * m


def mlp_forward(x, params):
    """x: (batch, in_features) f32. params: PyTorch-layout weights/biases."""
    w1, b1 = params["w1"], params["b1"]
    w2, b2 = params["w2"], params["b2"]
    w3, b3 = params["w3"], params["b3"]

    in_features = w1.shape[1]
    hidden = w1.shape[0]
    out_features = w3.shape[0]
    batch = x.shape[0]

    # Glue: transpose weights to (in, out); biases to (1, out) rows.
    w1t, w2t, w3t = w1.T, w2.T, w3.T
    b1r, b2r, b3r = b1[None, :], b2[None, :], b3[None, :]

    # Grid-step selection (this workload is launch/overhead-bound):
    #  - small/medium batch: one grid step covering the whole batch
#       (no jnp.pad, no output slice, no per-step pipeline overhead).
    #  - large batch: fat tiles, pad batch to a multiple of the tile, and mark
    #    the batch axis "parallel" so v7x's 2 TCs can split it.
    if batch <= MAX_SINGLE_TILE:
        tm = batch
        padded_batch = batch
    else:
        tm = TM_TILED
        padded_batch = _round_up(batch, tm)

    x_in = x
    if padded_batch != batch:
        x_in = jnp.pad(x, ((0, padded_batch - batch), (0, 0)))
    grid = (padded_batch // tm,)

    const = lambda i: (0, 0)  # weights/biases: DMA once, stay VMEM-resident

    out = pl.pallas_call(
        mlp_kernel,
        out_shape=jax.ShapeDtypeStruct((padded_batch, out_features), jnp.float32),
        grid_spec=pltpu.PrefetchScalarGridSpec(
            num_scalar_prefetch=0,
            grid=grid,
            in_specs=[
                pl.BlockSpec((tm, in_features), lambda i: (i, 0)),   # x
                pl.BlockSpec((in_features, hidden), const),          # w1
                pl.BlockSpec((1, hidden), const),                    # b1
                pl.BlockSpec((hidden, hidden), const),               # w2
                pl.BlockSpec((1, hidden), const),                    # b2
                pl.BlockSpec((hidden, out_features), const),         # w3
                pl.BlockSpec((1, out_features), const),              # b3
            ],
            out_specs=pl.BlockSpec((tm, out_features), lambda i: (i, 0)),
        ),
        compiler_params=pltpu.CompilerParams(
            dimension_semantics=("parallel",),  # no-op for grid=(1,), shards batch on v7x
        ),
    )(x_in, w1t, b1r, w2t, b2r, w3t, b3r)

    if padded_batch != batch:
        out = out[:batch]
    return out


def init_params(key, in_features, hidden, out_features):
    """Deterministic init mimicking nn.Linear's uniform(-1/sqrt(fan_in), +1/sqrt(fan_in))."""
    ks = jax.random.split(key, 6)

    def lin(kw, kb, fan_in, fan_out):
        bound = 1.0 / jnp.sqrt(jnp.float32(fan_in))
        w = jax.random.uniform(kw, (fan_out, fan_in), jnp.float32, -bound, bound)
        b = jax.random.uniform(kb, (fan_out,), jnp.float32, -bound, bound)
        return w, b

    w1, b1 = lin(ks[0], ks[1], in_features, hidden)
    w2, b2 = lin(ks[2], ks[3], hidden, hidden)
    w3, b3 = lin(ks[4], ks[5], hidden, out_features)
    return {"w1": w1, "b1": b1, "w2": w2, "b2": b2, "w3": w3, "b3": b3}


def mlp_reference(x, params):
    h1 = jnp.maximum(x @ params["w1"].T + params["b1"], 0.0)
    h2 = jnp.maximum(h1 @ params["w2"].T + params["b2"], 0.0)
    logits = h2 @ params["w3"].T + params["b3"]
    return jax.nn.softmax(logits, axis=-1)


if __name__ == "__main__":
    key = jax.random.PRNGKey(0)
    kx, kp = jax.random.split(key)

    x = jax.random.normal(kx, (BATCH, IN_FEATURES), jnp.float32)
    params = init_params(kp, IN_FEATURES, HIDDEN, OUT_FEATURES)

    out = jax.block_until_ready(mlp_forward(x, params))
    ref = mlp_reference(x, params)

    assert out.shape == (BATCH, OUT_FEATURES)
    assert jnp.allclose(out, ref, atol=1e-4, rtol=1e-4)
    assert jnp.allclose(jnp.sum(out, axis=-1), 1.0, atol=1e-5)

    print("KERNEL_OK")
</pallas_src>

<mosaic_0001>
module attributes {stable_mosaic.version = 11 : i64} {
  func.func @mlp_kernel(%arg0: i32, %arg1: memref<32x16xf32, #tpu.memory_space<vmem>>, %arg2: memref<16x24xf32, #tpu.memory_space<vmem>>, %arg3: memref<1x24xf32, #tpu.memory_space<vmem>>, %arg4: memref<24x24xf32, #tpu.memory_space<vmem>>, %arg5: memref<1x24xf32, #tpu.memory_space<vmem>>, %arg6: memref<24x8xf32, #tpu.memory_space<vmem>>, %arg7: memref<1x8xf32, #tpu.memory_space<vmem>>, %arg8: memref<32x8xf32, #tpu.memory_space<vmem>>) attributes {dimension_semantics = [#tpu.dimension_semantics<parallel>], iteration_bounds = array<i64: 1>, scalar_prefetch = 0 : i64, scratch_operands = 0 : i64, tpu.core_type = #tpu.core_type<tc>, window_params = [{transform_indices = @transform_0, window_bounds = array<i64: 32, 16>}, {pipeline_mode = #tpu.pipeline_mode<synchronous>, transform_indices = @transform_1, window_bounds = array<i64: 16, 24>}, {pipeline_mode = #tpu.pipeline_mode<synchronous>, transform_indices = @transform_2, window_bounds = array<i64: 1, 24>}, {pipeline_mode = #tpu.pipeline_mode<synchronous>, transform_indices = @transform_3, window_bounds = array<i64: 24, 24>}, {pipeline_mode = #tpu.pipeline_mode<synchronous>, transform_indices = @transform_4, window_bounds = array<i64: 1, 24>}, {pipeline_mode = #tpu.pipeline_mode<synchronous>, transform_indices = @transform_5, window_bounds = array<i64: 24, 8>}, {pipeline_mode = #tpu.pipeline_mode<synchronous>, transform_indices = @transform_6, window_bounds = array<i64: 1, 8>}, {transform_indices = @transform_7, window_bounds = array<i64: 32, 8>}]} {
    %c0 = arith.constant 0 : index
    %c0_0 = arith.constant 0 : index
    %0 = vector.load %arg1[%c0, %c0_0] : memref<32x16xf32, #tpu.memory_space<vmem>>, vector<32x16xf32>
    %c0_1 = arith.constant 0 : index
    %c0_2 = arith.constant 0 : index
    %1 = vector.load %arg2[%c0_1, %c0_2] : memref<16x24xf32, #tpu.memory_space<vmem>>, vector<16x24xf32>
    %cst = arith.constant dense<0.000000e+00> : vector<32x24xf32>
    %2 = tpu.matmul %0, %1, %cst {dimension_numbers = #tpu.dot_dimension_numbers<[1], [0], [0], [1], [0, 0, 1, 1], [], []>} : vector<32x16xf32>, vector<16x24xf32>, vector<32x24xf32> -> vector<32x24xf32>
    %c0_3 = arith.constant 0 : index
    %c0_4 = arith.constant 0 : index
    %3 = vector.load %arg3[%c0_3, %c0_4] : memref<1x24xf32, #tpu.memory_space<vmem>>, vector<1x24xf32>
    %4 = vector.broadcast %3 : vector<1x24xf32> to vector<32x24xf32>
    %5 = arith.addf %2, %4 : vector<32x24xf32>
    %cst_5 = arith.constant 0.000000e+00 : f32
    %6 = vector.broadcast %cst_5 : f32 to vector<32x24xf32>
    %7 = arith.maximumf %5, %6 : vector<32x24xf32>
    %c0_6 = arith.constant 0 : index
    %c0_7 = arith.constant 0 : index
    %8 = vector.load %arg4[%c0_6, %c0_7] : memref<24x24xf32, #tpu.memory_space<vmem>>, vector<24x24xf32>
    %cst_8 = arith.constant dense<0.000000e+00> : vector<32x24xf32>
    %9 = tpu.matmul %7, %8, %cst_8 {dimension_numbers = #tpu.dot_dimension_numbers<[1], [0], [0], [1], [0, 0, 1, 1], [], []>} : vector<32x24xf32>, vector<24x24xf32>, vector<32x24xf32> -> vector<32x24xf32>
    %c0_9 = arith.constant 0 : index
    %c0_10 = arith.constant 0 : index
    %10 = vector.load %arg5[%c0_9, %c0_10] : memref<1x24xf32, #tpu.memory_space<vmem>>, vector<1x24xf32>
    %11 = vector.broadcast %10 : vector<1x24xf32> to vector<32x24xf32>
    %12 = arith.addf %9, %11 : vector<32x24xf32>
    %cst_11 = arith.constant 0.000000e+00 : f32
    %13 = vector.broadcast %cst_11 : f32 to vector<32x24xf32>
    %14 = arith.maximumf %12, %13 : vector<32x24xf32>
    %c0_12 = arith.constant 0 : index
    %c0_13 = arith.constant 0 : index
    %15 = vector.load %arg6[%c0_12, %c0_13] : memref<24x8xf32, #tpu.memory_space<vmem>>, vector<24x8xf32>
    %cst_14 = arith.constant dense<0.000000e+00> : vector<32x8xf32>
    %16 = tpu.matmul %14, %15, %cst_14 {dimension_numbers = #tpu.dot_dimension_numbers<[1], [0], [0], [1], [0, 0, 1, 1], [], []>} : vector<32x24xf32>, vector<24x8xf32>, vector<32x8xf32> -> vector<32x8xf32>
    %c0_15 = arith.constant 0 : index
    %c0_16 = arith.constant 0 : index
    %17 = vector.load %arg7[%c0_15, %c0_16] : memref<1x8xf32, #tpu.memory_space<vmem>>, vector<1x8xf32>
    %18 = vector.broadcast %17 : vector<1x8xf32> to vector<32x8xf32>
    %19 = arith.addf %16, %18 : vector<32x8xf32>
    %cst_17 = arith.constant dense<0xFF800000> : vector<32xf32>
    %20 = vector.multi_reduction <maximumf>, %19, %cst_17 [1] : vector<32x8xf32> to vector<32xf32>
    %21 = vector.shape_cast %20 : vector<32xf32> to vector<32x1xf32>
    %22 = vector.broadcast %21 : vector<32x1xf32> to vector<32x8xf32>
    %23 = arith.subf %19, %22 : vector<32x8xf32>
    %24 = math.exp %23 : vector<32x8xf32>
    %cst_18 = arith.constant dense<0.000000e+00> : vector<32xf32>
    %25 = vector.multi_reduction <add>, %24, %cst_18 [1] : vector<32x8xf32> to vector<32xf32>
    %26 = vector.shape_cast %25 : vector<32xf32> to vector<32x1xf32>
    %27 = vector.broadcast %26 : vector<32x1xf32> to vector<32x8xf32>
    %28 = arith.divf %24, %27 : vector<32x8xf32>
    %c0_19 = arith.constant 0 : index
    %c0_20 = arith.constant 0 : index
    %29 = vector.load %arg8[%c0_19, %c0_20] : memref<32x8xf32, #tpu.memory_space<vmem>>, vector<32x8xf32>
    tpu.vector_store %arg8[%c0_19, %c0_20], %28 {strides = array<i32>} : memref<32x8xf32, #tpu.memory_space<vmem>>, vector<32x8xf32>,
    return
  }
  func.func @transform_0(%arg0: i32) -> (i32, i32) {
    %c0_i32 = arith.constant 0 : i32
    %c0_i32_0 = arith.constant 0 : i32
    return %arg0, %c0_i32 : i32, i32
  }
  func.func @transform_1(%arg0: i32) -> (i32, i32) {
    %c0_i32 = arith.constant 0 : i32
    %c0_i32_0 = arith.constant 0 : i32
    %c0_i32_1 = arith.constant 0 : i32
    return %c0_i32, %c0_i32_0 : i32, i32
  }
  func.func @transform_2(%arg0: i32) -> (i32, i32) {
    %c0_i32 = arith.constant 0 : i32
    %c0_i32_0 = arith.constant 0 : i32
    %c0_i32_1 = arith.constant 0 : i32
    return %c0_i32, %c0_i32_0 : i32, i32
  }
  func.func @transform_3(%arg0: i32) -> (i32, i32) {
    %c0_i32 = arith.constant 0 : i32
    %c0_i32_0 = arith.constant 0 : i32
    %c0_i32_1 = arith.constant 0 : i32
    return %c0_i32, %c0_i32_0 : i32, i32
  }
  func.func @transform_4(%arg0: i32) -> (i32, i32) {
    %c0_i32 = arith.constant 0 : i32
    %c0_i32_0 = arith.constant 0 : i32
    %c0_i32_1 = arith.constant 0 : i32
    return %c0_i32, %c0_i32_0 : i32, i32
  }
  func.func @transform_5(%arg0: i32) -> (i32, i32) {
    %c0_i32 = arith.constant 0 : i32
    %c0_i32_0 = arith.constant 0 : i32
    %c0_i32_1 = arith.constant 0 : i32
    return %c0_i32, %c0_i32_0 : i32, i32
  }
  func.func @transform_6(%arg0: i32) -> (i32, i32) {
    %c0_i32 = arith.constant 0 : i32
    %c0_i32_0 = arith.constant 0 : i32
    %c0_i32_1 = arith.constant 0 : i32
    return %c0_i32, %c0_i32_0 : i32, i32
  }
  func.func @transform_7(%arg0: i32) -> (i32, i32) {
    %c0_i32 = arith.constant 0 : i32
    %c0_i32_0 = arith.constant 0 : i32
    return %arg0, %c0_i32 : i32, i32
  }
}

</mosaic_0001>

<bundles_post_ra>
// kernel: tpu_custom_call.1
= control target key start
LH: loop header
LB: loop body
LE: loop exit
PB: predicated region body
PF: predicated region fallthrough
CT: control target
= control target key end

     0   :  { %vm36_vm0 = vcmask 130048   ;;  %vm89_vm1 = vcmask 195584   ;;  %vm183_vm2 = vcmask 64512   ;;  %s450_s1 = inlined_call_operand.vmem [shape: f32[16,24], index: 1, kind: input, shape index: {}]   ;;  %s451_s0 = inlined_call_operand.vmem [shape: f32[32,16], index: 0, kind: input, shape index: {}]   ;;  %s452_s2 = inlined_call_operand.vmem [shape: f32[1,24], index: 2, kind: input, shape index: {}]   ;;  %s453_s4 = inlined_call_operand.vmem [shape: f32[1,24], index: 4, kind: input, shape index: {}]   ;;  %s454_s3 = inlined_call_operand.vmem [shape: f32[24,24], index: 3, kind: input, shape index: {}]   ;;  %s455_s6 = inlined_call_operand.vmem [shape: f32[1,8], index: 6, kind: input, shape index: {}]   ;;  %s456_s5 = inlined_call_operand.vmem [shape: f32[24,8], index: 5, kind: input, shape index: {}]   ;;  %s457_s7 = inlined_call_operand.vmem [shape: f32[32,8], index: 7, kind: output, shape index: {}]  }
   0x1   :  { %v31_v0 = vld [vmem:[%s450_s1 + $0x8] sm:$0xff]  ;;  %v30_v1 = vld [vmem:[%s450_s1] sm:$0xff]  ;;  %v28_v4 = vld [vmem:[%s451_s0 + $0x10] sm:$0xff] }
   0x2   :  { %63 = vmatpush.msra.mxu0 %v31_v0  ;;  %v26_v2 = vld [vmem:[%s451_s0] sm:$0xff]  ;;  %v27_v3 = vld [vmem:[%s451_s0 + $0x8] sm:$0xff]  ;;  %v29_v5 = vld [vmem:[%s451_s0 + $0x18] sm:$0xff] }
   0x3   :  { %v84_v6 = vld [vmem:[%s454_s3 + $0x10] sm:$0xff]  ;;  %v83_v7 = vld [vmem:[%s454_s3 + $0x8] sm:$0xff]  ;;  %v82_v8 = vld [vmem:[%s454_s3] sm:$0xff] }
   0x4   :  { %64 = vmatpush.msra.mxu0 %v30_v1  ;;  %115 = vmatpush.msra.mxu1 %v84_v6  ;;  %v306_v9 = vld [vmem:[%s452_s2] ss:$0 sm:$0xff]  ;;  %v137_v22 = vld [vmem:[%s456_s5 + $0x10] sm:$0xff]  ;;  %v136_v23 = vld [vmem:[%s456_s5 + $0x8] sm:$0xff] }
   0x5   :  { %288 = vmatmul.msk.f32.vlgmr.msra.gmra.mxu0 %vm36_vm0, %v26_v2  ;;  %300 = vmatpush.msra.mxu3 %v84_v6  ;;  %v135_v24 = vld [vmem:[%s456_s5] sm:$0xff] }
   0x6   :  { %116 = vmatpush.msra.mxu1 %v83_v7  ;;  %303 = vmatpush.msra.mxu2 %v137_v22  ;;  %v307_v25 = vld [vmem:[%s453_s4] ss:$0 sm:$0xff] }
   0x7   :  { %301 = vmatpush.msra.mxu3 %v83_v7  ;;  %v308_v38 = vld [vmem:[%s455_s6] ss:$0 sm:$0xff] }
   0x8   :  { %117 = vmatpush.msra.mxu1 %v82_v8  ;;  %304 = vmatpush.msra.mxu2 %v136_v23 }
   0x9   :  { %302 = vmatpush.msra.mxu3 %v82_v8 }
   0xa   :  { %167 = vmatpush.msrb.mxu1 %v137_v22  ;;  %305 = vmatpush.msra.mxu2 %v135_v24 }
   0xc   :  { %168 = vmatpush.msrb.mxu1 %v136_v23 }
   0xd   :  { %289 = vmatmul.msk.f32.gmra.mxu0 %vm36_vm0, %v27_v3 }
   0xe   :  { %169 = vmatpush.msrb.mxu1 %v135_v24 }
  0x15   :  { %290 = vmatmul.msk.f32.gmra.mxu0 %vm36_vm0, %v28_v4 }
  0x1d   :  { %291 = vmatmul.msk.f32.gmra.mxu0 %vm36_vm0, %v29_v5 }
  0x82   :  { %v66_v10 = vpop.f32.mrf.mxu0 }
  0x83   :  { %v67_v11 = vadd.f32 %v306_v9, %v66_v10 }
  0x85   :  { %v78_v12 = vmax.f32 %v67_v11, 0.0 }
  0x87   :  { %292 = vmatmul.msk.f32.vlgmr.msra.gmra.mxu1 %vm89_vm1, %v78_v12 }
  0x8a   :  { %v69_v13 = vpop.f32.mrf.mxu0 }
  0x8b   :  { %v70_v14 = vadd.f32 %v306_v9, %v69_v13 }
  0x8d   :  { %v79_v15 = vmax.f32 %v70_v14, 0.0 }
  0x8f   :  { %293 = vmatmul.msk.f32.vlgmr.msra.gmra.mxu3 %vm89_vm1, %v79_v15 }
  0x92   :  { %v72_v16 = vpop.f32.mrf.mxu0 }
  0x93   :  { %v73_v17 = vadd.f32 %v306_v9, %v72_v16 }
  0x95   :  { %v80_v18 = vmax.f32 %v73_v17, 0.0 }
  0x97   :  { %294 = vmatmul.msk.f32.gmra.mxu3 %vm89_vm1, %v80_v18 }
  0x9a   :  { %v75_v19 = vpop.f32.mrf.mxu0 }
  0x9b   :  { %v76_v20 = vadd.f32 %v306_v9, %v75_v19 }
  0x9d   :  { %v81_v21 = vmax.f32 %v76_v20, 0.0 }
  0x9f   :  { %295 = vmatmul.msk.f32.gmra.mxu3 %vm89_vm1, %v81_v21 }
 0x104   :  { %v119_v26 = vpop.f32.mrf.mxu1 }
 0x105   :  { %v120_v27 = vadd.f32 %v307_v25, %v119_v26 }
 0x107   :  { %v131_v28 = vmax.f32 %v120_v27, 0.0 }
 0x109   :  { %296 = vmatmul.msk.f32.vlgmr.msrb.gmra.mxu1 %vm89_vm1, %v131_v28 }
 0x112   :  { %v122_v29 = vpop.f32.mrf.mxu3 }
 0x113   :  { %v123_v30 = vadd.f32 %v307_v25, %v122_v29 }
 0x115   :  { %v132_v31 = vmax.f32 %v123_v30, 0.0 }
 0x117   :  { %297 = vmatmul.msk.f32.vlgmr.msra.gmra.mxu2 %vm89_vm1, %v132_v31 }
 0x11a   :  { %v125_v32 = vpop.f32.mrf.mxu3 }
 0x11b   :  { %v126_v33 = vadd.f32 %v307_v25, %v125_v32 }
 0x11d   :  { %v133_v34 = vmax.f32 %v126_v33, 0.0 }
 0x11f   :  { %298 = vmatmul.msk.f32.gmra.mxu2 %vm89_vm1, %v133_v34 }
 0x122   :  { %v128_v35 = vpop.f32.mrf.mxu3 }
 0x123   :  { %v129_v36 = vadd.f32 %v307_v25, %v128_v35 }
 0x125   :  { %v134_v37 = vmax.f32 %v129_v36, 0.0 }
 0x127   :  { %299 = vmatmul.msk.f32.gmra.mxu2 %vm89_vm1, %v134_v37 }
 0x186   :  { %v171_v39 = vpop.f32.mrf.mxu1 }
 0x187   :  { %v172_v40 = vadd.f32 %v308_v38, %v171_v39 }
 0x189   :  { %v184_v41 = vsel %vm183_vm2, %v172_v40, -inf }
 0x18a   :  { %185 = vmax.xlane.f32.xlu0 %v184_v41 }
 0x19a   :  { %v174_v42 = vpop.f32.mrf.mxu2 }
 0x19b   :  { %v175_v43 = vadd.f32 %v308_v38, %v174_v42 }
 0x19d   :  { %v187_v44 = vsel %vm183_vm2, %v175_v43, -inf }
 0x19e   :  { %188 = vmax.xlane.f32.xlu0 %v187_v44 }
 0x1a2   :  { %v177_v45 = vpop.f32.mrf.mxu2 }
 0x1a3   :  { %v178_v46 = vadd.f32 %v308_v38, %v177_v45 }
 0x1a5   :  { %v190_v47 = vsel %vm183_vm2, %v178_v46, -inf }
 0x1a6   :  { %191 = vmax.xlane.f32.xlu1 %v190_v47 }
 0x1aa   :  { %v180_v48 = vpop.f32.mrf.mxu2 }
 0x1ab   :  { %v181_v49 = vadd.f32 %v308_v38, %v180_v48 }
 0x1ad   :  { %v193_v50 = vsel %vm183_vm2, %v181_v49, -inf }
 0x1ae   :  { %194 = vmax.xlane.f32.xlu1 %v193_v50 }
 0x1fd   :  { %v186_v51 = vpop.xlane.xlu0 %185 }
 0x1fe   :  { %v196_v52 = vsub.f32 %v172_v40, %v186_v51 }
 0x200   :  { %v200_v53 = vmul.f32 1.442695, %v196_v52 }
 0x202   :  { %309 = vpow2.f32 %v200_v53 }
 0x208   :  { %v310_v54 = vpop.eup %309 }
 0x209   :  { %v208_v55 = vsel %vm183_vm2, %v310_v54, 0.0 }
 0x20a   :  { %209 = vadd.xlane.f32.xlu2 %v208_v55 }
 0x211   :  { %v189_v56 = vpop.xlane.xlu0 %188 }
 0x212   :  { %v197_v57 = vsub.f32 %v175_v43, %v189_v56 }
 0x214   :  { %v202_v58 = vmul.f32 1.442695, %v197_v57 }
 0x216   :  { %311 = vpow2.f32 %v202_v58 }
 0x219   :  { %v192_v59 = vpop.xlane.xlu1 %191 }
 0x21a   :  { %v198_v60 = vsub.f32 %v178_v46, %v192_v59 }
 0x21c   :  { %v312_v61 = vpop.eup %311  ;;  %v204_v62 = vmul.f32 1.442695, %v198_v60 }
 0x21d   :  { %v211_v63 = vsel %vm183_vm2, %v312_v61, 0.0 }
 0x21e   :  { %313 = vpow2.f32 %v204_v62  ;;  %212 = vadd.xlane.f32.xlu2 %v211_v63 }
 0x221   :  { %v195_v0 = vpop.xlane.xlu1 %194 }
 0x222   :  { %v199_v1 = vsub.f32 %v181_v49, %v195_v0 }
 0x224   :  { %v424_v2 = vpop.eup %313  ;;  %v206_v3 = vmul.f32 1.442695, %v199_v1 }
 0x225   :  { %v214_v4 = vsel %vm183_vm2, %v424_v2, 0.0 }
 0x226   :  { %315 = vpow2.f32 %v206_v3  ;;  %215 = vadd.xlane.f32.xlu0 %v214_v4 }
 0x22c   :  { %v428_v5 = vpop.eup %315 }
 0x22d   :  { %v217_v6 = vsel %vm183_vm2, %v428_v5, 0.0 }
 0x22e   :  { %218 = vadd.xlane.f32.xlu1 %v217_v6 }
 0x27d   :  { %v210_v7 = vpop.xlane.xlu2 %209 }
 0x27e   :  { %317 = vrcp.f32 %v210_v7  ;;  %v231_v11 = vand.u32 2147483648, %v210_v7  ;;  %v229_v13 = vand.u32 2147483647, %v210_v7  ;;  %vm225_vm4 = vweird.f32 %v210_v7 }
 0x280   :  { %v232_v15 = vor.u32 1.1754944e-38, %v231_v11  ;;  %vm230_vm6 = vcmp.eq.f32.partialorder %v229_v13, 8.507059e+37 }
 0x284   :  { %v318_v8 = vpop.eup %317 }
 0x285   :  { %v221_v9 = vmul.f32 %v318_v8, %v210_v7  ;;  %vm226_vm3 = vweird.f32 %v318_v8 }
 0x286   :  { %vm227_vm5 = vmor %vm225_vm4, %vm226_vm3 }
 0x287   :  { %v222_v10 = vsub.f32 1.0, %v221_v9 }
 0x289   :  { %v223_v12 = vmul.f32 %v318_v8, %v222_v10 }
 0x28b   :  { %v224_v14 = vadd.f32 %v318_v8, %v223_v12 }
 0x28d   :  { %v228_v16 = vsel %vm227_vm5, %v318_v8, %v224_v14 }
 0x28e   :  { %v233_v17 = vsel %vm230_vm6, %v232_v15, %v228_v16 }
 0x28f   :  { %v234_v18 = vmul.f32 %v310_v54, %v233_v17 }
 0x291   :  { %280 = vst.msk [vmem:[%s457_s7] sm:$0xff] %vm183_vm2, %v234_v18  ;;  %v213_v19 = vpop.xlane.xlu2 %212 }
 0x292   :  { %319 = vrcp.f32 %v213_v19  ;;  %v246_v24 = vand.u32 2147483648, %v213_v19  ;;  %v244_v26 = vand.u32 2147483647, %v213_v19  ;;  %vm240_vm8 = vweird.f32 %v213_v19 }
 0x294   :  { %v247_v29 = vor.u32 1.1754944e-38, %v246_v24  ;;  %vm245_vm10 = vcmp.eq.f32.partialorder %v244_v26, 8.507059e+37 }
 0x298   :  { %v320_v20 = vpop.eup %319 }
 0x299   :  { %v236_v21 = vmul.f32 %v320_v20, %v213_v19  ;;  %v216_v22 = vpop.xlane.xlu0 %215  ;;  %vm241_vm7 = vweird.f32 %v320_v20 }
 0x29a   :  { %321 = vrcp.f32 %v216_v22  ;;  %vm242_vm9 = vmor %vm240_vm8, %vm241_vm7  ;;  %v261_v36 = vand.u32 2147483648, %v216_v22  ;;  %v259_v38 = vand.u32 2147483647, %v216_v22  ;;  %vm255_vm12 = vweird.f32 %v216_v22 }
 0x29b   :  { %v237_v23 = vsub.f32 1.0, %v236_v21 }
 0x29c   :  { %v262_v41 = vor.u32 1.1754944e-38, %v261_v36  ;;  %vm260_vm14 = vcmp.eq.f32.partialorder %v259_v38, 8.507059e+37 }
 0x29d   :  { %v238_v25 = vmul.f32 %v320_v20, %v237_v23 }
 0x29f   :  { %v239_v27 = vadd.f32 %v320_v20, %v238_v25 }
 0x2a0   :  { %v322_v28 = vpop.eup %321 }
 0x2a1   :  { %v243_v30 = vsel %vm242_vm9, %v320_v20, %v239_v27  ;;  %v251_v31 = vmul.f32 %v322_v28, %v216_v22  ;;  %v219_v32 = vpop.xlane.xlu1 %218  ;;  %vm256_vm11 = vweird.f32 %v322_v28 }
 0x2a2   :  { %v248_v33 = vsel %vm245_vm10, %v247_v29, %v243_v30  ;;  %323 = vrcp.f32 %v219_v32  ;;  %vm257_vm13 = vmor %vm255_vm12, %vm256_vm11  ;;  %v276_v47 = vand.u32 2147483648, %v219_v32  ;;  %v274_v49 = vand.u32 2147483647, %v219_v32 }
 0x2a3   :  { %v249_v34 = vmul.f32 %v312_v61, %v248_v33  ;;  %v252_v35 = vsub.f32 1.0, %v251_v31  ;;  %vm270_vm0 = vweird.f32 %v219_v32 }
 0x2a4   :  { %v277_v51 = vor.u32 1.1754944e-38, %v276_v47  ;;  %vm275_vm3 = vcmp.eq.f32.partialorder %v274_v49, 8.507059e+37 }
 0x2a5   :  { %281 = vst.msk [vmem:[%s457_s7 + $0x8] sm:$0xff] %vm183_vm2, %v249_v34  ;;  %v253_v37 = vmul.f32 %v322_v28, %v252_v35 }
 0x2a7   :  { %v254_v39 = vadd.f32 %v322_v28, %v253_v37 }
 0x2a8   :  { %v324_v40 = vpop.eup %323 }
 0x2a9   :  { %v258_v42 = vsel %vm257_vm13, %v322_v28, %v254_v39  ;;  %v266_v43 = vmul.f32 %v324_v40, %v219_v32  ;;  %vm271_vm15 = vweird.f32 %v324_v40 }
 0x2aa   :  { %v263_v44 = vsel %vm260_vm14, %v262_v41, %v258_v42  ;;  %vm272_vm1 = vmor %vm270_vm0, %vm271_vm15 }
 0x2ab   :  { %v264_v45 = vmul.f32 %v424_v2, %v263_v44  ;;  %v267_v46 = vsub.f32 1.0, %v266_v43 }
 0x2ad   :  { %282 = vst.msk [vmem:[%s457_s7 + $0x10] sm:$0xff] %vm183_vm2, %v264_v45  ;;  %v268_v48 = vmul.f32 %v324_v40, %v267_v46 }
 0x2af   :  { %v269_v50 = vadd.f32 %v324_v40, %v268_v48 }
 0x2b1   :  { %v273_v52 = vsel %vm272_vm1, %v324_v40, %v269_v50 }
 0x2b2   :  { %v278_v53 = vsel %vm275_vm3, %v277_v51, %v273_v52 }
 0x2b3   :  { %v279_v54 = vmul.f32 %v428_v5, %v278_v53 }
 0x2b5   :  { %283 = vst.msk [vmem:[%s457_s7 + $0x18] sm:$0xff] %vm183_vm2, %v279_v54 }

</bundles_post_ra>
